<compile_context>
chip_gen: v5e
topology: v5e:2x2
jax: 0.10.0
libtpu: 0.0.40
codegen_flags: <defaults>
</compile_context>

<pallas_src>
import jax
import jax.numpy as jnp
from jax.experimental import pallas as pl
from jax.experimental.pallas import tpu as pltpu

LANE = 128


def _round_up(n, m):
    return ((n + m - 1) // m) * m


def mlp_kernel(x_ref, w1_ref, b1_ref, w2_ref, b2_ref, o_ref, acc_ref):
    j = pl.program_id(1)  # hidden-chunk index (reduction axis, innermost)

    @pl.when(j == 0)
    def _init():
        acc_ref[...] = jnp.zeros_like(acc_ref)

    # hidden chunk = relu(x @ W1[:, j] + b1[j])   (dropout = identity in eval)
    h = jnp.dot(x_ref[...], w1_ref[...], preferred_element_type=jnp.float32)
    h = jnp.maximum(h + b1_ref[...].astype(jnp.float32), 0.0)
    # accumulate this chunk's contribution to the output in f32
    acc_ref[...] += jnp.dot(h.astype(w2_ref.dtype), w2_ref[...],
                            preferred_element_type=jnp.float32)

    @pl.when(j == pl.num_programs(1) - 1)
    def _finalize():
        o_ref[...] = (acc_ref[...] + b2_ref[...].astype(jnp.float32)).astype(o_ref.dtype)


def _build_call(*, B, Kp, Np, TILE_B, TILE_H, n_h, out_dtype, vmem_limit, cost,
                single_buffer_resident):
    def spec(shape, imap, resident):
        if resident and single_buffer_resident:
            # Constant index_map -> buffer once; double buffering is pure waste.
            return pl.BlockSpec(shape, imap, pipeline_mode=pl.Buffered(1))
        return pl.BlockSpec(shape, imap)

    in_specs = [
        pl.BlockSpec((TILE_B, Kp), lambda i, j: (i, 0)),            # x streams over batch
        spec((Kp, TILE_H), lambda i, j: (0, j), n_h == 1),          # W1 (chunk / resident)
        spec((1, TILE_H), lambda i, j: (0, j), n_h == 1),           # b1
        spec((TILE_H, Np), lambda i, j: (j, 0), n_h == 1),          # W2 (chunk / resident)
        spec((1, Np), lambda i, j: (0, 0), True),                   # b2 always resident
    ]
    return pl.pallas_call(
        mlp_kernel,
        out_shape=jax.ShapeDtypeStruct((B, Np), out_dtype),
        grid=(pl.cdiv(B, TILE_B), n_h),
        in_specs=in_specs,
        out_specs=pl.BlockSpec((TILE_B, Np), lambda i, j: (i, 0)),
        scratch_shapes=[pltpu.VMEM((TILE_B, Np), jnp.float32)],
        compiler_params=pltpu.CompilerParams(
            dimension_semantics=("parallel", "arbitrary"),
            vmem_limit_bytes=vmem_limit,
        ),
        cost_estimate=cost,
    )


def downstream_mlp(x, w1, b1, w2, b2, *, tile_b=512, tile_h=512, use_bf16=True):
    """x: [B, input_dim]; w1: [input_dim, H]; b1: [1, H];
    w2: [H, num_classes]; b2: [1, num_classes]. Returns [B, num_classes]."""
    B, K = x.shape
    H = w1.shape[1]
    N = w2.shape[1]
    assert w1.shape == (K, H) and w2.shape == (H, N)
    assert b1.shape == (1, H) and b2.shape == (1, N)

    out_dtype = x.dtype
    compute_dtype = jnp.bfloat16 if use_bf16 else x.dtype
    cbytes = jnp.dtype(compute_dtype).itemsize
    obytes = jnp.dtype(out_dtype).itemsize
    SUB = 16 if cbytes == 2 else 8  # native sublane tile for the activation dtype

    Kp = _round_up(K, LANE)
    Hp = _round_up(H, LANE)
    Np = _round_up(N, LANE)

    # Batch tile: large (amortize per-step overhead, fill the 256-row MXU on
    # v6e/v7x) but keep >= 2 tiles when possible so the "parallel" batch axis
    # can occupy both TensorCores on v7x.
    TILE_B = _round_up(min(tile_b, B), SUB)
    if pl.cdiv(B, TILE_B) < 2 and B > SUB:
        TILE_B = _round_up(pl.cdiv(B, 2), SUB)

    # Hidden chunk: whole hidden dim when it fits; otherwise stream W1/W2 over
    # an "arbitrary" grid axis and accumulate into the f32 output scratch.
    TILE_H = min(_round_up(min(tile_h, Hp), LANE), Hp)

    # Generation-aware VMEM cap (~100 MiB on v5e/v6e, ~50 MiB on v7x).
    try:
        vmem_phys = int(pltpu.get_tpu_info().vmem_capacity_bytes)
    except Exception:
        vmem_phys = 64 << 20
    vmem_cap = int(vmem_phys * 0.78)

    def budget(tb, th):
        nh = pl.cdiv(Hp, th)
        wbuf = 1 if nh == 1 else 2
        return (
            2 * tb * Kp * cbytes                     # x tile (double buffered)
            + 2 * tb * Np * obytes                   # out tile (double buffered)
            + wbuf * (Kp * th + th * Np) * cbytes    # W1 / W2 chunks
            + (8 * th + 8 * Np) * 4                  # biases (sublane padded)
            + tb * Np * 4                            # f32 accumulator scratch
            + tb * th * (4 + cbytes)                 # live f32 hidden + cast copy
            + (4 << 20)                              # compiler scratch / sem slack
        )

    while budget(TILE_B, TILE_H) > vmem_cap and TILE_H > LANE:
        TILE_H = max(LANE, _round_up(TILE_H // 2, LANE))
    while budget(TILE_B, TILE_H) > vmem_cap and TILE_B > SUB:
        TILE_B = max(SUB, _round_up(TILE_B // 2, SUB))

    n_h = pl.cdiv(Hp, TILE_H)
    Hp = n_h * TILE_H  # make the hidden chunk divide the padded hidden dim
    vmem_limit = int(min(max(budget(TILE_B, TILE_H), 16 << 20), vmem_cap))

    def pad2(a, r, c):
        dr, dc = r - a.shape[0], c - a.shape[1]
        return jnp.pad(a, ((0, dr), (0, dc))) if (dr or dc) else a

    def cast(a, dt):
        return a.astype(dt) if a.dtype != dt else a

    # Zero padding of K/H/N is exact: padded W1 columns have b1 = 0 so
    # relu(0) = 0, and padded W2 rows are 0 -> contribute nothing.
    # The batch dim is NOT padded; the partial edge block is masked on store.
    x_p = cast(pad2(x, B, Kp), compute_dtype)
    w1_p = cast(pad2(w1, Kp, Hp), compute_dtype)
    w2_p = cast(pad2(w2, Hp, Np), compute_dtype)
    b1_p = pad2(b1, 1, Hp)   # biases stay in their original (f32) dtype
    b2_p = pad2(b2, 1, Np)

    cost = pl.CostEstimate(
        flops=2 * B * (Kp * Hp + Hp * Np),
        bytes_accessed=(x_p.size * cbytes
                        + (w1_p.size + w2_p.size) * cbytes
                        + (b1_p.size + b2_p.size) * b1_p.dtype.itemsize
                        + B * Np * obytes),
        transcendentals=0,
    )

    kwargs = dict(B=B, Kp=Kp, Np=Np, TILE_B=TILE_B, TILE_H=TILE_H, n_h=n_h,
                  out_dtype=out_dtype, vmem_limit=vmem_limit, cost=cost)
    args = (x_p, w1_p, b1_p, w2_p, b2_p)
    try:
        out_p = _build_call(single_buffer_resident=True, **kwargs)(*args)
    except Exception:
        # Fallback for JAX versions that reject pl.Buffered(1) single-buffering.
        out_p = _build_call(single_buffer_resident=False, **kwargs)(*args)

    return out_p if N == Np else out_p[:, :N]


def init_params(key, input_dim, hidden_layer_size, num_classes, dtype=jnp.float32):
    """Deterministic PyTorch-style (uniform +/- 1/sqrt(fan_in)) init.
    Weights stored as [in, out] (PyTorch weight transposed) for x @ W."""
    k1, k2, k3, k4 = jax.random.split(key, 4)
    bound1 = 1.0 / (input_dim ** 0.5)
    bound2 = 1.0 / (hidden_layer_size ** 0.5)
    w1 = jax.random.uniform(k1, (input_dim, hidden_layer_size),
                            minval=-bound1, maxval=bound1, dtype=dtype)
    b1 = jax.random.uniform(k2, (1, hidden_layer_size),
                            minval=-bound1, maxval=bound1, dtype=dtype)
    w2 = jax.random.uniform(k3, (hidden_layer_size, num_classes),
                            minval=-bound2, maxval=bound2, dtype=dtype)
    b2 = jax.random.uniform(k4, (1, num_classes),
                            minval=-bound2, maxval=bound2, dtype=dtype)
    return w1, b1, w2, b2


if __name__ == "__main__":
    # Small shapes consistent with the module's forward: x is [batch, input_dim].
    batch = 8
    input_dim = 32
    hidden_layer_size = 64
    num_classes = 16
    dropout_prob = 0.1  # identity in eval mode

    key = jax.random.PRNGKey(0)
    kx, kp = jax.random.split(key)
    x = jax.random.normal(kx, (batch, input_dim), dtype=jnp.float32)
    w1, b1, w2, b2 = init_params(kp, input_dim, hidden_layer_size, num_classes)

    ref = jnp.maximum(x @ w1 + b1, 0.0) @ w2 + b2

    # Default fast path: bf16 MXU operands, f32 accumulation.
    out_bf16 = jax.block_until_ready(downstream_mlp(x, w1, b1, w2, b2))
    assert out_bf16.shape == (batch, num_classes)
    assert jnp.allclose(out_bf16, ref, atol=5e-2, rtol=5e-2)

    # Full-precision path (tight check vs the f32 reference).
    out_f32 = jax.block_until_ready(downstream_mlp(x, w1, b1, w2, b2, use_bf16=False))
    assert jnp.allclose(out_f32, ref, atol=1e-5, rtol=1e-5)

    # Multi-tile batch with a partial edge block (exercises cdiv grid + masked store).
    batch2 = 40
    x2 = jax.random.normal(jax.random.PRNGKey(1), (batch2, input_dim), dtype=jnp.float32)
    ref2 = jnp.maximum(x2 @ w1 + b1, 0.0) @ w2 + b2
    out2 = jax.block_until_ready(
        downstream_mlp(x2, w1, b1, w2, b2, tile_b=24, use_bf16=False))
    assert out2.shape == (batch2, num_classes)
    assert jnp.allclose(out2, ref2, atol=1e-5, rtol=1e-5)

    print("KERNEL_OK")
</pallas_src>

<mosaic_0001>
module attributes {stable_mosaic.version = 11 : i64} {
  func.func @mlp_kernel(%arg0: i32, %arg1: i32, %arg2: memref<16x128xbf16, #tpu.memory_space<vmem>>, %arg3: memref<128x128xbf16, #tpu.memory_space<vmem>>, %arg4: memref<1x128xf32, #tpu.memory_space<vmem>>, %arg5: memref<128x128xbf16, #tpu.memory_space<vmem>>, %arg6: memref<1x128xf32, #tpu.memory_space<vmem>>, %arg7: memref<16x128xf32, #tpu.memory_space<vmem>>, %arg8: memref<16x128xf32, #tpu.memory_space<vmem>>) attributes {dimension_semantics = [#tpu.dimension_semantics<parallel>, #tpu.dimension_semantics<arbitrary>], iteration_bounds = array<i64: 1, 1>, scalar_prefetch = 0 : i64, scratch_operands = 1 : i64, tpu.core_type = #tpu.core_type<tc>, window_params = [{transform_indices = @transform_0, window_bounds = array<i64: 16, 128>}, {pipeline_mode = #tpu.pipeline_mode<synchronous>, transform_indices = @transform_1, window_bounds = array<i64: 128, 128>}, {pipeline_mode = #tpu.pipeline_mode<synchronous>, transform_indices = @transform_2, window_bounds = array<i64: 1, 128>}, {pipeline_mode = #tpu.pipeline_mode<synchronous>, transform_indices = @transform_3, window_bounds = array<i64: 128, 128>}, {pipeline_mode = #tpu.pipeline_mode<synchronous>, transform_indices = @transform_4, window_bounds = array<i64: 1, 128>}, {transform_indices = @transform_5, window_bounds = array<i64: 16, 128>}]} {
    %c0_i32 = arith.constant 0 : i32
    %0 = arith.cmpi eq, %arg1, %c0_i32 : i32
    %1 = arith.extui %0 : i1 to i32
    %c0_i32_0 = arith.constant 0 : i32
    %2 = arith.cmpi ne, %1, %c0_i32_0 : i32
    scf.if %2 {
      %cst_16 = arith.constant 0.000000e+00 : f32
      %20 = vector.broadcast %cst_16 : f32 to vector<16x128xf32>
      %c0_17 = arith.constant 0 : index
      %c0_18 = arith.constant 0 : index
      %21 = vector.load %arg8[%c0_17, %c0_18] : memref<16x128xf32, #tpu.memory_space<vmem>>, vector<16x128xf32>
      tpu.vector_store %arg8[%c0_17, %c0_18], %20 {strides = array<i32>} : memref<16x128xf32, #tpu.memory_space<vmem>>, vector<16x128xf32>,
    } else {
    }
    %c0 = arith.constant 0 : index
    %c0_1 = arith.constant 0 : index
    %3 = vector.load %arg2[%c0, %c0_1] : memref<16x128xbf16, #tpu.memory_space<vmem>>, vector<16x128xbf16>
    %c0_2 = arith.constant 0 : index
    %c0_3 = arith.constant 0 : index
    %4 = vector.load %arg3[%c0_2, %c0_3] : memref<128x128xbf16, #tpu.memory_space<vmem>>, vector<128x128xbf16>
    %cst = arith.constant dense<0.000000e+00> : vector<16x128xf32>
    %5 = tpu.matmul %3, %4, %cst {dimension_numbers = #tpu.dot_dimension_numbers<[1], [0], [0], [1], [0, 0, 1, 1], [], []>} : vector<16x128xbf16>, vector<128x128xbf16>, vector<16x128xf32> -> vector<16x128xf32>
    %c0_4 = arith.constant 0 : index
    %c0_5 = arith.constant 0 : index
    %6 = vector.load %arg4[%c0_4, %c0_5] : memref<1x128xf32, #tpu.memory_space<vmem>>, vector<1x128xf32>
    %7 = vector.broadcast %6 : vector<1x128xf32> to vector<16x128xf32>
    %8 = arith.addf %5, %7 : vector<16x128xf32>
    %cst_6 = arith.constant 0.000000e+00 : f32
    %9 = vector.broadcast %cst_6 : f32 to vector<16x128xf32>
    %10 = arith.maximumf %8, %9 : vector<16x128xf32>
    %c0_7 = arith.constant 0 : index
    %c0_8 = arith.constant 0 : index
    %11 = vector.load %arg8[%c0_7, %c0_8] : memref<16x128xf32, #tpu.memory_space<vmem>>, vector<16x128xf32>
    %12 = arith.truncf %10 : vector<16x128xf32> to vector<16x128xbf16>
    %c0_9 = arith.constant 0 : index
    %c0_10 = arith.constant 0 : index
    %13 = vector.load %arg5[%c0_9, %c0_10] : memref<128x128xbf16, #tpu.memory_space<vmem>>, vector<128x128xbf16>
    %cst_11 = arith.constant dense<0.000000e+00> : vector<16x128xf32>
    %14 = tpu.matmul %12, %13, %cst_11 {dimension_numbers = #tpu.dot_dimension_numbers<[1], [0], [0], [1], [0, 0, 1, 1], [], []>} : vector<16x128xbf16>, vector<128x128xbf16>, vector<16x128xf32> -> vector<16x128xf32>
    %15 = arith.addf %11, %14 : vector<16x128xf32>
    %c0_12 = arith.constant 0 : index
    %c0_13 = arith.constant 0 : index
    %16 = vector.load %arg8[%c0_12, %c0_13] : memref<16x128xf32, #tpu.memory_space<vmem>>, vector<16x128xf32>
    tpu.vector_store %arg8[%c0_12, %c0_13], %15 {strides = array<i32>} : memref<16x128xf32, #tpu.memory_space<vmem>>, vector<16x128xf32>,
    %c0_i32_14 = arith.constant 0 : i32
    %17 = arith.cmpi eq, %arg1, %c0_i32_14 : i32
    %18 = arith.extui %17 : i1 to i32
    %c0_i32_15 = arith.constant 0 : i32
    %19 = arith.cmpi ne, %18, %c0_i32_15 : i32
    scf.if %19 {
      %c0_16 = arith.constant 0 : index
      %c0_17 = arith.constant 0 : index
      %20 = vector.load %arg8[%c0_16, %c0_17] : memref<16x128xf32, #tpu.memory_space<vmem>>, vector<16x128xf32>
      %c0_18 = arith.constant 0 : index
      %c0_19 = arith.constant 0 : index
      %21 = vector.load %arg6[%c0_18, %c0_19] : memref<1x128xf32, #tpu.memory_space<vmem>>, vector<1x128xf32>
      %22 = vector.broadcast %21 : vector<1x128xf32> to vector<16x128xf32>
      %23 = arith.addf %20, %22 : vector<16x128xf32>
      %c0_20 = arith.constant 0 : index
      %c0_21 = arith.constant 0 : index
      %24 = vector.load %arg7[%c0_20, %c0_21] : memref<16x128xf32, #tpu.memory_space<vmem>>, vector<16x128xf32>
      tpu.vector_store %arg7[%c0_20, %c0_21], %23 {strides = array<i32>} : memref<16x128xf32, #tpu.memory_space<vmem>>, vector<16x128xf32>,
    } else {
    }
    return
  }
  func.func @transform_0(%arg0: i32, %arg1: i32) -> (i32, i32) {
    %c0_i32 = arith.constant 0 : i32
    %c0_i32_0 = arith.constant 0 : i32
    return %arg0, %c0_i32 : i32, i32
  }
  func.func @transform_1(%arg0: i32, %arg1: i32) -> (i32, i32) {
    %c0_i32 = arith.constant 0 : i32
    %c0_i32_0 = arith.constant 0 : i32
    return %c0_i32, %arg1 : i32, i32
  }
  func.func @transform_2(%arg0: i32, %arg1: i32) -> (i32, i32) {
    %c0_i32 = arith.constant 0 : i32
    %c0_i32_0 = arith.constant 0 : i32
    return %c0_i32, %arg1 : i32, i32
  }
  func.func @transform_3(%arg0: i32, %arg1: i32) -> (i32, i32) {
    %c0_i32 = arith.constant 0 : i32
    %c0_i32_0 = arith.constant 0 : i32
    return %arg1, %c0_i32 : i32, i32
  }
  func.func @transform_4(%arg0: i32, %arg1: i32) -> (i32, i32) {
    %c0_i32 = arith.constant 0 : i32
    %c0_i32_0 = arith.constant 0 : i32
    %c0_i32_1 = arith.constant 0 : i32
    return %c0_i32, %c0_i32_0 : i32, i32
  }
  func.func @transform_5(%arg0: i32, %arg1: i32) -> (i32, i32) {
    %c0_i32 = arith.constant 0 : i32
    %c0_i32_0 = arith.constant 0 : i32
    return %arg0, %c0_i32 : i32, i32
  }
}

module attributes {stable_mosaic.version = 11 : i64} {
  func.func @mlp_kernel(%arg0: i32, %arg1: i32, %arg2: memref<16x128xbf16, #tpu.memory_space<vmem>>, %arg3: memref<128x128xbf16, #tpu.memory_space<vmem>>, %arg4: memref<1x128xf32, #tpu.memory_space<vmem>>, %arg5: memref<128x128xbf16, #tpu.memory_space<vmem>>, %arg6: memref<1x128xf32, #tpu.memory_space<vmem>>, %arg7: memref<16x128xf32, #tpu.memory_space<vmem>>, %arg8: memref<16x128xf32, #tpu.memory_space<vmem>>) attributes {dimension_semantics = [#tpu.dimension_semantics<parallel>, #tpu.dimension_semantics<arbitrary>], iteration_bounds = array<i64: 1, 1>, scalar_prefetch = 0 : i64, scratch_operands = 1 : i64, tpu.core_type = #tpu.core_type<tc>, window_params = [{transform_indices = @transform_0, window_bounds = array<i64: 16, 128>}, {transform_indices = @transform_1, window_bounds = array<i64: 128, 128>}, {transform_indices = @transform_2, window_bounds = array<i64: 1, 128>}, {transform_indices = @transform_3, window_bounds = array<i64: 128, 128>}, {pipeline_mode = #tpu.pipeline_mode<synchronous>, transform_indices = @transform_4, window_bounds = array<i64: 1, 128>}, {transform_indices = @transform_5, window_bounds = array<i64: 16, 128>}]} {
    %c0_i32 = arith.constant 0 : i32
    %0 = arith.cmpi eq, %arg1, %c0_i32 : i32
    %1 = arith.extui %0 : i1 to i32
    %c0_i32_0 = arith.constant 0 : i32
    %2 = arith.cmpi ne, %1, %c0_i32_0 : i32
    scf.if %2 {
      %cst_16 = arith.constant 0.000000e+00 : f32
      %20 = vector.broadcast %cst_16 : f32 to vector<16x128xf32>
      %c0_17 = arith.constant 0 : index
      %c0_18 = arith.constant 0 : index
      %21 = vector.load %arg8[%c0_17, %c0_18] : memref<16x128xf32, #tpu.memory_space<vmem>>, vector<16x128xf32>
      tpu.vector_store %arg8[%c0_17, %c0_18], %20 {strides = array<i32>} : memref<16x128xf32, #tpu.memory_space<vmem>>, vector<16x128xf32>,
    } else {
    }
    %c0 = arith.constant 0 : index
    %c0_1 = arith.constant 0 : index
    %3 = vector.load %arg2[%c0, %c0_1] : memref<16x128xbf16, #tpu.memory_space<vmem>>, vector<16x128xbf16>
    %c0_2 = arith.constant 0 : index
    %c0_3 = arith.constant 0 : index
    %4 = vector.load %arg3[%c0_2, %c0_3] : memref<128x128xbf16, #tpu.memory_space<vmem>>, vector<128x128xbf16>
    %cst = arith.constant dense<0.000000e+00> : vector<16x128xf32>
    %5 = tpu.matmul %3, %4, %cst {dimension_numbers = #tpu.dot_dimension_numbers<[1], [0], [0], [1], [0, 0, 1, 1], [], []>} : vector<16x128xbf16>, vector<128x128xbf16>, vector<16x128xf32> -> vector<16x128xf32>
    %c0_4 = arith.constant 0 : index
    %c0_5 = arith.constant 0 : index
    %6 = vector.load %arg4[%c0_4, %c0_5] : memref<1x128xf32, #tpu.memory_space<vmem>>, vector<1x128xf32>
    %7 = vector.broadcast %6 : vector<1x128xf32> to vector<16x128xf32>
    %8 = arith.addf %5, %7 : vector<16x128xf32>
    %cst_6 = arith.constant 0.000000e+00 : f32
    %9 = vector.broadcast %cst_6 : f32 to vector<16x128xf32>
    %10 = arith.maximumf %8, %9 : vector<16x128xf32>
    %c0_7 = arith.constant 0 : index
    %c0_8 = arith.constant 0 : index
    %11 = vector.load %arg8[%c0_7, %c0_8] : memref<16x128xf32, #tpu.memory_space<vmem>>, vector<16x128xf32>
    %12 = arith.truncf %10 : vector<16x128xf32> to vector<16x128xbf16>
    %c0_9 = arith.constant 0 : index
    %c0_10 = arith.constant 0 : index
    %13 = vector.load %arg5[%c0_9, %c0_10] : memref<128x128xbf16, #tpu.memory_space<vmem>>, vector<128x128xbf16>
    %cst_11 = arith.constant dense<0.000000e+00> : vector<16x128xf32>
    %14 = tpu.matmul %12, %13, %cst_11 {dimension_numbers = #tpu.dot_dimension_numbers<[1], [0], [0], [1], [0, 0, 1, 1], [], []>} : vector<16x128xbf16>, vector<128x128xbf16>, vector<16x128xf32> -> vector<16x128xf32>
    %15 = arith.addf %11, %14 : vector<16x128xf32>
    %c0_12 = arith.constant 0 : index
    %c0_13 = arith.constant 0 : index
    %16 = vector.load %arg8[%c0_12, %c0_13] : memref<16x128xf32, #tpu.memory_space<vmem>>, vector<16x128xf32>
    tpu.vector_store %arg8[%c0_12, %c0_13], %15 {strides = array<i32>} : memref<16x128xf32, #tpu.memory_space<vmem>>, vector<16x128xf32>,
    %c0_i32_14 = arith.constant 0 : i32
    %17 = arith.cmpi eq, %arg1, %c0_i32_14 : i32
    %18 = arith.extui %17 : i1 to i32
    %c0_i32_15 = arith.constant 0 : i32
    %19 = arith.cmpi ne, %18, %c0_i32_15 : i32
    scf.if %19 {
      %c0_16 = arith.constant 0 : index
      %c0_17 = arith.constant 0 : index
      %20 = vector.load %arg8[%c0_16, %c0_17] : memref<16x128xf32, #tpu.memory_space<vmem>>, vector<16x128xf32>
      %c0_18 = arith.constant 0 : index
      %c0_19 = arith.constant 0 : index
      %21 = vector.load %arg6[%c0_18, %c0_19] : memref<1x128xf32, #tpu.memory_space<vmem>>, vector<1x128xf32>
      %22 = vector.broadcast %21 : vector<1x128xf32> to vector<16x128xf32>
      %23 = arith.addf %20, %22 : vector<16x128xf32>
      %c0_20 = arith.constant 0 : index
      %c0_21 = arith.constant 0 : index
      %24 = vector.load %arg7[%c0_20, %c0_21] : memref<16x128xf32, #tpu.memory_space<vmem>>, vector<16x128xf32>
      tpu.vector_store %arg7[%c0_20, %c0_21], %23 {strides = array<i32>} : memref<16x128xf32, #tpu.memory_space<vmem>>, vector<16x128xf32>,
    } else {
    }
    return
  }
  func.func @transform_0(%arg0: i32, %arg1: i32) -> (i32, i32) {
    %c0_i32 = arith.constant 0 : i32
    %c0_i32_0 = arith.constant 0 : i32
    return %arg0, %c0_i32 : i32, i32
  }
  func.func @transform_1(%arg0: i32, %arg1: i32) -> (i32, i32) {
    %c0_i32 = arith.constant 0 : i32
    %c0_i32_0 = arith.constant 0 : i32
    return %c0_i32, %arg1 : i32, i32
  }
  func.func @transform_2(%arg0: i32, %arg1: i32) -> (i32, i32) {
    %c0_i32 = arith.constant 0 : i32
    %c0_i32_0 = arith.constant 0 : i32
    return %c0_i32, %arg1 : i32, i32
  }
  func.func @transform_3(%arg0: i32, %arg1: i32) -> (i32, i32) {
    %c0_i32 = arith.constant 0 : i32
    %c0_i32_0 = arith.constant 0 : i32
    return %arg1, %c0_i32 : i32, i32
  }
  func.func @transform_4(%arg0: i32, %arg1: i32) -> (i32, i32) {
    %c0_i32 = arith.constant 0 : i32
    %c0_i32_0 = arith.constant 0 : i32
    %c0_i32_1 = arith.constant 0 : i32
    return %c0_i32, %c0_i32_0 : i32, i32
  }
  func.func @transform_5(%arg0: i32, %arg1: i32) -> (i32, i32) {
    %c0_i32 = arith.constant 0 : i32
    %c0_i32_0 = arith.constant 0 : i32
    return %arg0, %c0_i32 : i32, i32
  }
}

</mosaic_0001>

<bundles_post_ra>
// kernel: tpu_custom_call.1
= control target key start
LH: loop header
LB: loop body
LE: loop exit
PB: predicated region body
PF: predicated region fallthrough
CT: control target
= control target key end

     0   :  { %10 = vsyncpa [#allocation4], 0  ;;  %s537_s0 = inlined_call_operand.hbm [shape: bf16[8,128], index: 0, kind: input, shape index: {}]   ;;  %s538_s1 = inlined_call_operand.hbm [shape: bf16[128,128], index: 1, kind: input, shape index: {}]   ;;  %s539_s2 = inlined_call_operand.vmem [shape: f32[1,128], index: 2, kind: input, shape index: {}]   ;;  %s540_s3 = inlined_call_operand.hbm [shape: bf16[128,128], index: 3, kind: input, shape index: {}]   ;;  %s541_s4 = inlined_call_operand.vmem [shape: f32[1,128], index: 4, kind: input, shape index: {}]   ;;  %s542_s5 = inlined_call_operand.hbm [shape: f32[8,128], index: 5, kind: output, shape index: {}]  }
   0x1   :  { %11 = vsyncpa [#allocation7], 0 }
   0x2   :  { %12 = vsyncpa [#allocation5], 0 }
   0x3   :  { %16 = vsyncadd [#allocation4], 64  ;;  %s30_s20 = sshll.u32 %s538_s1, 4  ;;  %s481_s21 = smov [#allocation6]   ;;  %s31_s20 = int_to_ptr.hbm [resolvable:$true] %s30_s20 }
   0x4   :  { %s32_s22 = sshll.u32 %s481_s21, 4  ;;  %s17_s25 = sshll.u32 %s537_s0, 4  ;;  %s33_s22 = int_to_ptr.vmem [resolvable:$true] %s32_s22  ;;  %s18_s25 = int_to_ptr.hbm [resolvable:$true] %s17_s25 }
   0x5   :  { %s482_s26 = smov 64   ;;  %s483_s27 = smov 4  }
   0x6   :  { %38 = dma.hbm_to_vmem [thread:$0]  %s31_s20, 1024, %s33_s22, [#allocation7], %s482_s26, %s482_s26, %s483_s27  }
   0x7   :  { %s484_s28 = smov [#allocation3]   ;;  %s45_s7 = sshll.u32 %s540_s3, 4  ;;  %s46_s7 = int_to_ptr.hbm [resolvable:$true] %s45_s7 }
   0x8   :  { %s19_s29 = sshll.u32 %s484_s28, 4  ;;  %s485_s1 = smov [#allocation8]   ;;  %s20_s29 = int_to_ptr.vmem [resolvable:$true] %s19_s29 }
   0x9   :  { %25 = dma.hbm_to_vmem [thread:$0]  %s18_s25, 64, %s20_s29, [#allocation4], %s482_s26, %s482_s26, %s483_s27  }
   0xa   :  { %s47_s8 = sshll.u32 %s485_s1, 4  ;;  %s48_s8 = int_to_ptr.vmem [resolvable:$true] %s47_s8 }
   0xb   :  { %53 = dma.hbm_to_vmem [thread:$0]  %s46_s7, 1024, %s48_s8, [#allocation7], %s482_s26, %s482_s26, %s483_s27  }
   0xc   :  { %475 = dma.done.wait [#allocation4], 128  }
   0xd   :  { %476 = vsyncadd [#allocation4], 4294967168 }
   0xe   :  { %477 = dma.done.wait [#allocation7], 2048  }
   0xf   :  { %478 = vsyncadd [#allocation7], 4294965248  ;;  %v360_v0 = vld [vmem:[#allocation6 + $0x38] sm:$0xff]  ;;  %v359_v1 = vld [vmem:[#allocation6 + $0x30] sm:$0xff] }
  0x10   :  { %150 = vmatpush.bf16.msra.mxu0 %v360_v0  ;;  %v368_v2 = vld [vmem:[#allocation8 + $0x38] sm:$0xff]  ;;  %v367_v3 = vld [vmem:[#allocation8 + $0x30] sm:$0xff]  ;;  %v358_v4 = vld [vmem:[#allocation6 + $0x28] sm:$0xff] }
  0x11   :  { %233 = vmatpush.bf16.msra.mxu1 %v368_v2  ;;  %v366_v5 = vld [vmem:[#allocation8 + $0x28] sm:$0xff]  ;;  %v357_v6 = vld [vmem:[#allocation6 + $0x20] sm:$0xff]  ;;  %v356_v8 = vld [vmem:[#allocation6 + $0x18] sm:$0xff] }
  0x12   :  { %v365_v7 = vld [vmem:[#allocation8 + $0x20] sm:$0xff]  ;;  %v355_v9 = vld [vmem:[#allocation6 + $0x10] sm:$0xff]  ;;  %v354_v10 = vld [vmem:[#allocation6 + $0x8] sm:$0xff] }
  0x13   :  { %v353_v11 = vld [vmem:[#allocation6] sm:$0xff]  ;;  %v352_v12 = vld [vmem:[#allocation3] sm:$0xff]  ;;  %v363_v14 = vld [vmem:[#allocation8 + $0x10] sm:$0xff] }
  0x14   :  { %151 = vmatpush.bf16.msra.mxu0 %v359_v1  ;;  %v364_v13 = vld [vmem:[#allocation8 + $0x18] sm:$0xff]  ;;  %v362_v15 = vld [vmem:[#allocation8 + $0x8] sm:$0xff]  ;;  %v361_v16 = vld [vmem:[#allocation8] sm:$0xff] }
  0x15   :  { %234 = vmatpush.bf16.msra.mxu1 %v367_v3  ;;  %v377_v18 = vld [vmem:[%s539_s2] ss:$0 sm:$0xff] }
  0x16   :  { %v378_v25 = vld [vmem:[%s541_s4] ss:$0 sm:$0xff] }
  0x18   :  { %152 = vmatpush.bf16.msra.mxu0 %v358_v4 }
  0x19   :  { %235 = vmatpush.bf16.msra.mxu1 %v366_v5 }
  0x1c   :  { %153 = vmatpush.bf16.msra.mxu0 %v357_v6 }
  0x1d   :  { %236 = vmatpush.bf16.msra.mxu1 %v365_v7 }
  0x20   :  { %154 = vmatpush.bf16.msra.mxu0 %v356_v8 }
  0x21   :  { %237 = vmatpush.bf16.msra.mxu1 %v364_v13 }
  0x24   :  { %155 = vmatpush.bf16.msra.mxu0 %v355_v9 }
  0x25   :  { %238 = vmatpush.bf16.msra.mxu1 %v363_v14 }
  0x28   :  { %156 = vmatpush.bf16.msra.mxu0 %v354_v10 }
  0x29   :  { %239 = vmatpush.bf16.msra.mxu1 %v362_v15 }
  0x2c   :  { %157 = vmatpush.bf16.msra.mxu0 %v353_v11 }
  0x2d   :  { %240 = vmatpush.bf16.msra.mxu1 %v361_v16 }
  0x2f   :  { %158 = vmatmul.bf16.vlgmr.msra.gmra.mxu0 %v352_v12 }
  0xac   :  { %v159_v17 = vpop.f32.mrf.mxu0 }
  0xad   :  { %v160_v19 = vadd.f32 %v377_v18, %v159_v17 }
  0xaf   :  { %v164_v22 = vmax.f32 %v160_v19, 0.0 }
  0xb4   :  { %v161_v20 = vpop.f32.mrf.mxu0 }
  0xb5   :  { %v162_v21 = vadd.f32 %v377_v18, %v161_v20 }
  0xb7   :  { %v165_v23 = vmax.f32 %v162_v21, 0.0 }
  0xb9   :  { %v168_v24 = vpack.c.bf16 %v165_v23, %v164_v22 }
  0xbb   :  { %241 = vmatmul.bf16.vlgmr.msra.gmra.mxu1 %v168_v24 }
 0x138   :  { %v242_v26 = vpop.f32.mrf.mxu1 }
 0x139   :  { %v260_v27 = vadd.f32 %v378_v25, %v242_v26 }
 0x13b   :  { %262 = vst [vmem:[#allocation9] sm:$0xff] %v260_v27 }
 0x140   :  { %v244_v28 = vpop.f32.mrf.mxu1 }
 0x141   :  { %v261_v29 = vadd.f32 %v378_v25, %v244_v28 }
 0x143   :  { %263 = vst [vmem:[#allocation9 + $0x8] sm:$0xff] %v261_v29 }
 0x144   :  { %267 = vsyncadd [#allocation5], 128  ;;  %s270_s12 = sshll.u32 %s542_s5, 4  ;;  %s486_s13 = smov [#allocation9]   ;;  %s271_s12 = int_to_ptr.hbm [resolvable:$true] %s270_s12 }
 0x145   :  { %s268_s14 = sshll.u32 %s486_s13, 4  ;;  %s487_s15 = smov 128   ;;  %s269_s14 = int_to_ptr.vmem [resolvable:$true] %s268_s14 }
 0x146   :  { %s488_s16 = smov 8  }
 0x147   :  { %276 = dma.vmem_to_hbm [thread:$0]  %s269_s14, 128, %s271_s12, [#allocation5], %s487_s15, %s487_s15, %s488_s16  }
 0x148   :  { %479 = dma.done.wait [#allocation5], 256  }
 0x149   :  { %480 = vsyncadd [#allocation5], 4294967040 }
 0x14a   :  { %281 = vsyncpa [#allocation4], 1 }
 0x14b   :  { %282 = vsyncpa [#allocation7], 1 }
 0x14c   :  { %283 = vsyncpa [#allocation5], 1 }

// kernel: tpu_custom_call.1
= control target key start
LH: loop header
LB: loop body
LE: loop exit
PB: predicated region body
PF: predicated region fallthrough
CT: control target
= control target key end

     0   :  { %10 = vsyncpa [#allocation4], 0  ;;  %s537_s0 = inlined_call_operand.hbm [shape: bf16[8,128], index: 0, kind: input, shape index: {}]   ;;  %s538_s1 = inlined_call_operand.hbm [shape: bf16[128,128], index: 1, kind: input, shape index: {}]   ;;  %s539_s2 = inlined_call_operand.vmem [shape: f32[1,128], index: 2, kind: input, shape index: {}]   ;;  %s540_s3 = inlined_call_operand.hbm [shape: bf16[128,128], index: 3, kind: input, shape index: {}]   ;;  %s541_s4 = inlined_call_operand.vmem [shape: f32[1,128], index: 4, kind: input, shape index: {}]   ;;  %s542_s5 = inlined_call_operand.hbm [shape: f32[8,128], index: 5, kind: output, shape index: {}]  }
   0x1   :  { %11 = vsyncpa [#allocation7], 0 }
   0x2   :  { %12 = vsyncpa [#allocation5], 0 }
   0x3   :  { %16 = vsyncadd [#allocation4], 64  ;;  %s30_s20 = sshll.u32 %s538_s1, 4  ;;  %s481_s21 = smov [#allocation6]   ;;  %s31_s20 = int_to_ptr.hbm [resolvable:$true] %s30_s20 }
   0x4   :  { %s32_s22 = sshll.u32 %s481_s21, 4  ;;  %s17_s25 = sshll.u32 %s537_s0, 4  ;;  %s33_s22 = int_to_ptr.vmem [resolvable:$true] %s32_s22  ;;  %s18_s25 = int_to_ptr.hbm [resolvable:$true] %s17_s25 }
   0x5   :  { %s482_s26 = smov 64   ;;  %s483_s27 = smov 4  }
   0x6   :  { %38 = dma.hbm_to_vmem [thread:$0]  %s31_s20, 1024, %s33_s22, [#allocation7], %s482_s26, %s482_s26, %s483_s27  }
   0x7   :  { %s484_s28 = smov [#allocation3]   ;;  %s45_s7 = sshll.u32 %s540_s3, 4  ;;  %s46_s7 = int_to_ptr.hbm [resolvable:$true] %s45_s7 }
   0x8   :  { %s19_s29 = sshll.u32 %s484_s28, 4  ;;  %s485_s1 = smov [#allocation8]   ;;  %s20_s29 = int_to_ptr.vmem [resolvable:$true] %s19_s29 }
   0x9   :  { %25 = dma.hbm_to_vmem [thread:$0]  %s18_s25, 64, %s20_s29, [#allocation4], %s482_s26, %s482_s26, %s483_s27  }
   0xa   :  { %s47_s8 = sshll.u32 %s485_s1, 4  ;;  %s48_s8 = int_to_ptr.vmem [resolvable:$true] %s47_s8 }
   0xb   :  { %53 = dma.hbm_to_vmem [thread:$0]  %s46_s7, 1024, %s48_s8, [#allocation7], %s482_s26, %s482_s26, %s483_s27  }
   0xc   :  { %475 = dma.done.wait [#allocation4], 128  }
   0xd   :  { %476 = vsyncadd [#allocation4], 4294967168 }
   0xe   :  { %477 = dma.done.wait [#allocation7], 2048  }
   0xf   :  { %478 = vsyncadd [#allocation7], 4294965248  ;;  %v360_v0 = vld [vmem:[#allocation6 + $0x38] sm:$0xff]  ;;  %v359_v1 = vld [vmem:[#allocation6 + $0x30] sm:$0xff] }
  0x10   :  { %150 = vmatpush.bf16.msra.mxu0 %v360_v0  ;;  %v368_v2 = vld [vmem:[#allocation8 + $0x38] sm:$0xff]  ;;  %v367_v3 = vld [vmem:[#allocation8 + $0x30] sm:$0xff]  ;;  %v358_v4 = vld [vmem:[#allocation6 + $0x28] sm:$0xff] }
  0x11   :  { %233 = vmatpush.bf16.msra.mxu1 %v368_v2  ;;  %v366_v5 = vld [vmem:[#allocation8 + $0x28] sm:$0xff]  ;;  %v357_v6 = vld [vmem:[#allocation6 + $0x20] sm:$0xff]  ;;  %v356_v8 = vld [vmem:[#allocation6 + $0x18] sm:$0xff] }
  0x12   :  { %v365_v7 = vld [vmem:[#allocation8 + $0x20] sm:$0xff]  ;;  %v355_v9 = vld [vmem:[#allocation6 + $0x10] sm:$0xff]  ;;  %v354_v10 = vld [vmem:[#allocation6 + $0x8] sm:$0xff] }
  0x13   :  { %v353_v11 = vld [vmem:[#allocation6] sm:$0xff]  ;;  %v352_v12 = vld [vmem:[#allocation3] sm:$0xff]  ;;  %v363_v14 = vld [vmem:[#allocation8 + $0x10] sm:$0xff] }
  0x14   :  { %151 = vmatpush.bf16.msra.mxu0 %v359_v1  ;;  %v364_v13 = vld [vmem:[#allocation8 + $0x18] sm:$0xff]  ;;  %v362_v15 = vld [vmem:[#allocation8 + $0x8] sm:$0xff]  ;;  %v361_v16 = vld [vmem:[#allocation8] sm:$0xff] }
  0x15   :  { %234 = vmatpush.bf16.msra.mxu1 %v367_v3  ;;  %v377_v18 = vld [vmem:[%s539_s2] ss:$0 sm:$0xff] }
  0x16   :  { %v378_v25 = vld [vmem:[%s541_s4] ss:$0 sm:$0xff] }
  0x18   :  { %152 = vmatpush.bf16.msra.mxu0 %v358_v4 }
  0x19   :  { %235 = vmatpush.bf16.msra.mxu1 %v366_v5 }
  0x1c   :  { %153 = vmatpush.bf16.msra.mxu0 %v357_v6 }
  0x1d   :  { %236 = vmatpush.bf16.msra.mxu1 %v365_v7 }
  0x20   :  { %154 = vmatpush.bf16.msra.mxu0 %v356_v8 }
  0x21   :  { %237 = vmatpush.bf16.msra.mxu1 %v364_v13 }
  0x24   :  { %155 = vmatpush.bf16.msra.mxu0 %v355_v9 }
  0x25   :  { %238 = vmatpush.bf16.msra.mxu1 %v363_v14 }
  0x28   :  { %156 = vmatpush.bf16.msra.mxu0 %v354_v10 }
  0x29   :  { %239 = vmatpush.bf16.msra.mxu1 %v362_v15 }
  0x2c   :  { %157 = vmatpush.bf16.msra.mxu0 %v353_v11 }
  0x2d   :  { %240 = vmatpush.bf16.msra.mxu1 %v361_v16 }
  0x2f   :  { %158 = vmatmul.bf16.vlgmr.msra.gmra.mxu0 %v352_v12 }
  0xac   :  { %v159_v17 = vpop.f32.mrf.mxu0 }
  0xad   :  { %v160_v19 = vadd.f32 %v377_v18, %v159_v17 }
  0xaf   :  { %v164_v22 = vmax.f32 %v160_v19, 0.0 }
  0xb4   :  { %v161_v20 = vpop.f32.mrf.mxu0 }
  0xb5   :  { %v162_v21 = vadd.f32 %v377_v18, %v161_v20 }
  0xb7   :  { %v165_v23 = vmax.f32 %v162_v21, 0.0 }
  0xb9   :  { %v168_v24 = vpack.c.bf16 %v165_v23, %v164_v22 }
  0xbb   :  { %241 = vmatmul.bf16.vlgmr.msra.gmra.mxu1 %v168_v24 }
 0x138   :  { %v242_v26 = vpop.f32.mrf.mxu1 }
 0x139   :  { %v260_v27 = vadd.f32 %v378_v25, %v242_v26 }
 0x13b   :  { %262 = vst [vmem:[#allocation9] sm:$0xff] %v260_v27 }
 0x140   :  { %v244_v28 = vpop.f32.mrf.mxu1 }
 0x141   :  { %v261_v29 = vadd.f32 %v378_v25, %v244_v28 }
 0x143   :  { %263 = vst [vmem:[#allocation9 + $0x8] sm:$0xff] %v261_v29 }
 0x144   :  { %267 = vsyncadd [#allocation5], 128  ;;  %s270_s12 = sshll.u32 %s542_s5, 4  ;;  %s486_s13 = smov [#allocation9]   ;;  %s271_s12 = int_to_ptr.hbm [resolvable:$true] %s270_s12 }
 0x145   :  { %s268_s14 = sshll.u32 %s486_s13, 4  ;;  %s487_s15 = smov 128   ;;  %s269_s14 = int_to_ptr.vmem [resolvable:$true] %s268_s14 }
 0x146   :  { %s488_s16 = smov 8  }
 0x147   :  { %276 = dma.vmem_to_hbm [thread:$0]  %s269_s14, 128, %s271_s12, [#allocation5], %s487_s15, %s487_s15, %s488_s16  }
 0x148   :  { %479 = dma.done.wait [#allocation5], 256  }
 0x149   :  { %480 = vsyncadd [#allocation5], 4294967040 }
 0x14a   :  { %281 = vsyncpa [#allocation4], 1 }
 0x14b   :  { %282 = vsyncpa [#allocation7], 1 }
 0x14c   :  { %283 = vsyncpa [#allocation5], 1 }

</bundles_post_ra>
